<compile_context>
chip_gen: v5e
topology: v5e:2x2
jax: 0.10.0
libtpu: 0.0.40
codegen_flags: <defaults>
</compile_context>

<pallas_src>
import jax
import jax.numpy as jnp
from jax.experimental import pallas as pl
from jax.experimental.pallas import tpu as pltpu


def _round_up(x, m):
    return ((x + m - 1) // m) * m


def _critic_kernel(x_ref, a_ref,
                   w1_ref, b1_ref,
                   w2h_ref, w2a_ref, b2_ref,
                   w3_ref, b3_ref,
                   o_ref):
    # In-kernel bf16 cast: free VPU work hidden under the MXU/DMA, avoids the
    # extra HBM round trip a wrapper-side astype would cost.
    xb = x_ref[...].astype(jnp.bfloat16)
    ab = a_ref[...].astype(jnp.bfloat16)

    # fc1 + relu   (bf16 x bf16 -> f32 accumulate on the MXU)
    h1 = jnp.dot(xb, w1_ref[...], preferred_element_type=jnp.float32)
    h1 = jnp.maximum(h1 + b1_ref[...], 0.0)

    # fc2 over cat([h1, a]) + relu   (split-weight formulation, no concat)
    h2 = jnp.dot(h1.astype(jnp.bfloat16), w2h_ref[...],
                 preferred_element_type=jnp.float32)
    h2 = h2 + jnp.dot(ab, w2a_ref[...], preferred_element_type=jnp.float32)
    h2 = jnp.maximum(h2 + b2_ref[...], 0.0)

    # fc3 as an MXU dot against a zero-padded (H2, 128) weight: only column 0
    # is real.  The (TB, 128) result block is lane-dense (unmasked vst, wide
    # writeback DMA); the wrapper slices column 0.  Out-of-range batch rows of
    # a partial last tile are clipped by Pallas on the HBM store.
    q = jnp.dot(h2.astype(jnp.bfloat16), w3_ref[...],
                preferred_element_type=jnp.float32)
    o_ref[...] = (q + b3_ref[0, 0]).astype(o_ref.dtype)


@jax.jit
def critic_forward(x, a, w1, b1, w2h, w2a, b2, w3p, b3):
    """DDPG critic forward.

    x: (B, S) f32, a: (B, A) f32.
    Weights stored as (in, out) in bf16; w3p is fc3's weight zero-padded to
    (H2, 128) with the real column at index 0.  Biases f32: b1 (1,H1),
    b2 (1,H2), b3 (1,1) SMEM scalar.  Returns (B, 1) f32.
    """
    B, S = x.shape
    A = a.shape[1]
    H1 = w1.shape[1]
    H2 = w2h.shape[1]

    # Batch tiling:
    #  * B <= 64: one tile covering the whole batch (block == full array, so
    #    the (8,128) divisibility rule does not apply).
    #  * B  > 64: >= 2 grid steps (v7x megacore sharding via "parallel"),
    #    tiles capped at 1024 rows (v5e scoped-VMEM safe), multiple of 8.
    if B <= 64:
        TB = B
    else:
        TB = min(1024, _round_up(pl.cdiv(B, 2), 8))
    grid = (pl.cdiv(B, TB),)

    flops = 2 * B * (S * H1 + (H1 + A) * H2 + H2 * 128)
    bytes_accessed = (
        B * (S + A) * 4                                   # activations (f32)
        + (S * H1 + (H1 + A) * H2 + H2 * 128) * 2         # weights (bf16)
        + (H1 + H2 + 1) * 4                               # biases (f32)
        + B * 128 * 4                                     # lane-dense output
    )

    resident = lambda i: (0, 0)   # weights/biases: same block every grid step
    # TODO(synk): mark resident weight specs pipeline_mode=pl.Buffered(1) once
    # single-buffered invariant inputs are confirmed supported; ~90 KB of
    # VMEM headroom, no correctness impact.

    out_full = pl.pallas_call(
        _critic_kernel,
        out_shape=jax.ShapeDtypeStruct((B, 128), jnp.float32),
        grid=grid,
        in_specs=[
            pl.BlockSpec((TB, S), lambda i: (i, 0)),      # x  (f32, cast in-kernel)
            pl.BlockSpec((TB, A), lambda i: (i, 0)),      # a  (f32, cast in-kernel)
            pl.BlockSpec((S, H1), resident),              # w1   (bf16)
            pl.BlockSpec((1, H1), resident),              # b1   (f32)
            pl.BlockSpec((H1, H2), resident),             # w2h  (bf16)
            pl.BlockSpec((A, H2), resident),              # w2a  (bf16)
            pl.BlockSpec((1, H2), resident),              # b2   (f32)
            pl.BlockSpec((H2, 128), resident),            # w3   (bf16, zero-padded)
            pl.BlockSpec(memory_space=pltpu.SMEM),        # b3 scalar (f32)
        ],
        out_specs=pl.BlockSpec((TB, 128), lambda i: (i, 0)),
        compiler_params=pltpu.CompilerParams(
            dimension_semantics=("parallel",)),
        cost_estimate=pl.CostEstimate(
            flops=flops, transcendentals=0, bytes_accessed=bytes_accessed),
    )(x, a, w1, b1, w2h, w2a, b2, w3p, b3)

    return out_full[:, :1]


def fanin_init(key, shape, fanin=None):
    # Matches torch fanin_init: uniform(-1/sqrt(fanin), 1/sqrt(fanin)).
    # PyTorch weight shape is (out, in) so fanin = out_features there; we keep
    # the same bound semantics while storing weights as (in, out).
    fanin = fanin or shape[0]
    v = 1.0 / jnp.sqrt(jnp.float32(fanin))
    return jax.random.uniform(key, shape, jnp.float32, -v, v)


if __name__ == "__main__":
    # Small shapes consistent with the module's forward
    B = 8            # batch
    nb_states = 32
    nb_actions = 16
    hidden1 = 128
    hidden2 = 128
    init_w = 0.003

    key = jax.random.PRNGKey(0)
    keys = jax.random.split(key, 10)

    x = jax.random.normal(keys[0], (B, nb_states), jnp.float32)
    a = jax.random.normal(keys[1], (B, nb_actions), jnp.float32)

    # Parameters stored as (in, out); biases use 1/sqrt(fan_in)-style bounds.
    w1_f32 = fanin_init(keys[2], (nb_states, hidden1), fanin=hidden1)
    b1 = jax.random.uniform(keys[3], (1, hidden1), jnp.float32,
                            -1.0 / jnp.sqrt(nb_states), 1.0 / jnp.sqrt(nb_states))
    w2_f32 = fanin_init(keys[4], (hidden1 + nb_actions, hidden2), fanin=hidden2)
    b2 = jax.random.uniform(keys[5], (1, hidden2), jnp.float32,
                            -1.0 / jnp.sqrt(hidden1 + nb_actions),
                            1.0 / jnp.sqrt(hidden1 + nb_actions))
    w3_f32 = jax.random.uniform(keys[6], (hidden2, 1), jnp.float32, -init_w, init_w)
    b3 = jax.random.uniform(keys[7], (1, 1), jnp.float32, -init_w, init_w)

    # One-time parameter preprocessing (outside the per-forward hot path):
    #  * split fc2 weight into the h1 part and the action part,
    #  * cast matmul weights to bf16,
    #  * zero-pad fc3 weight to (hidden2, 128) for the lane-dense MXU fc3.
    w1 = w1_f32.astype(jnp.bfloat16)
    w2h = w2_f32[:hidden1].astype(jnp.bfloat16)
    w2a = w2_f32[hidden1:].astype(jnp.bfloat16)
    w3p = jnp.pad(w3_f32, ((0, 0), (0, 127))).astype(jnp.bfloat16)

    out = critic_forward(x, a, w1, b1, w2h, w2a, b2, w3p, b3)
    out = jax.block_until_ready(out)

    # Pure-JAX f32 reference (concat form); loose tolerance for bf16 operands.
    h1 = jnp.maximum(x @ w1_f32 + b1, 0.0)
    h2 = jnp.maximum(jnp.concatenate([h1, a], axis=1) @ w2_f32 + b2, 0.0)
    ref = h2 @ w3_f32 + b3
    assert out.shape == (B, 1)
    assert jnp.allclose(out, ref, atol=3e-2, rtol=3e-2), (out, ref)

    print("KERNEL_OK")
</pallas_src>

<mosaic_0001>
module attributes {stable_mosaic.version = 11 : i64} {
  func.func @_critic_kernel(%arg0: i32, %arg1: memref<8x32xf32, #tpu.memory_space<vmem>>, %arg2: memref<8x16xf32, #tpu.memory_space<vmem>>, %arg3: memref<32x128xbf16, #tpu.memory_space<vmem>>, %arg4: memref<1x128xf32, #tpu.memory_space<vmem>>, %arg5: memref<128x128xbf16, #tpu.memory_space<vmem>>, %arg6: memref<16x128xbf16, #tpu.memory_space<vmem>>, %arg7: memref<1x128xf32, #tpu.memory_space<vmem>>, %arg8: memref<128x128xbf16, #tpu.memory_space<vmem>>, %arg9: memref<1x1xf32, #tpu.memory_space<smem>>, %arg10: memref<8x128xf32, #tpu.memory_space<vmem>>) attributes {dimension_semantics = [#tpu.dimension_semantics<parallel>], iteration_bounds = array<i64: 1>, scalar_prefetch = 0 : i64, scratch_operands = 0 : i64, tpu.core_type = #tpu.core_type<tc>, window_params = [{transform_indices = @transform_0, window_bounds = array<i64: 8, 32>}, {transform_indices = @transform_1, window_bounds = array<i64: 8, 16>}, {pipeline_mode = #tpu.pipeline_mode<synchronous>, transform_indices = @transform_2, window_bounds = array<i64: 32, 128>}, {pipeline_mode = #tpu.pipeline_mode<synchronous>, transform_indices = @transform_3, window_bounds = array<i64: 1, 128>}, {pipeline_mode = #tpu.pipeline_mode<synchronous>, transform_indices = @transform_4, window_bounds = array<i64: 128, 128>}, {pipeline_mode = #tpu.pipeline_mode<synchronous>, transform_indices = @transform_5, window_bounds = array<i64: 16, 128>}, {pipeline_mode = #tpu.pipeline_mode<synchronous>, transform_indices = @transform_6, window_bounds = array<i64: 1, 128>}, {pipeline_mode = #tpu.pipeline_mode<synchronous>, transform_indices = @transform_7, window_bounds = array<i64: 128, 128>}, {transform_indices = @transform_8, window_bounds = array<i64: 1, 1>}, {transform_indices = @transform_9, window_bounds = array<i64: 8, 128>}]} {
    %c0 = arith.constant 0 : index
    %c0_0 = arith.constant 0 : index
    %0 = vector.load %arg1[%c0, %c0_0] : memref<8x32xf32, #tpu.memory_space<vmem>>, vector<8x32xf32>
    %1 = arith.truncf %0 : vector<8x32xf32> to vector<8x32xbf16>
    %c0_1 = arith.constant 0 : index
    %c0_2 = arith.constant 0 : index
    %2 = vector.load %arg2[%c0_1, %c0_2] : memref<8x16xf32, #tpu.memory_space<vmem>>, vector<8x16xf32>
    %3 = arith.truncf %2 : vector<8x16xf32> to vector<8x16xbf16>
    %c0_3 = arith.constant 0 : index
    %c0_4 = arith.constant 0 : index
    %4 = vector.load %arg3[%c0_3, %c0_4] : memref<32x128xbf16, #tpu.memory_space<vmem>>, vector<32x128xbf16>
    %cst = arith.constant dense<0.000000e+00> : vector<8x128xf32>
    %5 = tpu.matmul %1, %4, %cst {dimension_numbers = #tpu.dot_dimension_numbers<[1], [0], [0], [1], [0, 0, 1, 1], [], []>} : vector<8x32xbf16>, vector<32x128xbf16>, vector<8x128xf32> -> vector<8x128xf32>
    %c0_5 = arith.constant 0 : index
    %c0_6 = arith.constant 0 : index
    %6 = vector.load %arg4[%c0_5, %c0_6] : memref<1x128xf32, #tpu.memory_space<vmem>>, vector<1x128xf32>
    %7 = vector.broadcast %6 : vector<1x128xf32> to vector<8x128xf32>
    %8 = arith.addf %5, %7 : vector<8x128xf32>
    %cst_7 = arith.constant 0.000000e+00 : f32
    %9 = vector.broadcast %cst_7 : f32 to vector<8x128xf32>
    %10 = arith.maximumf %8, %9 : vector<8x128xf32>
    %11 = arith.truncf %10 : vector<8x128xf32> to vector<8x128xbf16>
    %c0_8 = arith.constant 0 : index
    %c0_9 = arith.constant 0 : index
    %12 = vector.load %arg5[%c0_8, %c0_9] : memref<128x128xbf16, #tpu.memory_space<vmem>>, vector<128x128xbf16>
    %cst_10 = arith.constant dense<0.000000e+00> : vector<8x128xf32>
    %13 = tpu.matmul %11, %12, %cst_10 {dimension_numbers = #tpu.dot_dimension_numbers<[1], [0], [0], [1], [0, 0, 1, 1], [], []>} : vector<8x128xbf16>, vector<128x128xbf16>, vector<8x128xf32> -> vector<8x128xf32>
    %c0_11 = arith.constant 0 : index
    %c0_12 = arith.constant 0 : index
    %14 = vector.load %arg6[%c0_11, %c0_12] : memref<16x128xbf16, #tpu.memory_space<vmem>>, vector<16x128xbf16>
    %cst_13 = arith.constant dense<0.000000e+00> : vector<8x128xf32>
    %15 = tpu.matmul %3, %14, %cst_13 {dimension_numbers = #tpu.dot_dimension_numbers<[1], [0], [0], [1], [0, 0, 1, 1], [], []>} : vector<8x16xbf16>, vector<16x128xbf16>, vector<8x128xf32> -> vector<8x128xf32>
    %16 = arith.addf %13, %15 : vector<8x128xf32>
    %c0_14 = arith.constant 0 : index
    %c0_15 = arith.constant 0 : index
    %17 = vector.load %arg7[%c0_14, %c0_15] : memref<1x128xf32, #tpu.memory_space<vmem>>, vector<1x128xf32>
    %18 = vector.broadcast %17 : vector<1x128xf32> to vector<8x128xf32>
    %19 = arith.addf %16, %18 : vector<8x128xf32>
    %cst_16 = arith.constant 0.000000e+00 : f32
    %20 = vector.broadcast %cst_16 : f32 to vector<8x128xf32>
    %21 = arith.maximumf %19, %20 : vector<8x128xf32>
    %22 = arith.truncf %21 : vector<8x128xf32> to vector<8x128xbf16>
    %c0_17 = arith.constant 0 : index
    %c0_18 = arith.constant 0 : index
    %23 = vector.load %arg8[%c0_17, %c0_18] : memref<128x128xbf16, #tpu.memory_space<vmem>>, vector<128x128xbf16>
    %cst_19 = arith.constant dense<0.000000e+00> : vector<8x128xf32>
    %24 = tpu.matmul %22, %23, %cst_19 {dimension_numbers = #tpu.dot_dimension_numbers<[1], [0], [0], [1], [0, 0, 1, 1], [], []>} : vector<8x128xbf16>, vector<128x128xbf16>, vector<8x128xf32> -> vector<8x128xf32>
    %c0_20 = arith.constant 0 : index
    %c0_21 = arith.constant 0 : index
    %25 = memref.load %arg9[%c0_20, %c0_21] : memref<1x1xf32, #tpu.memory_space<smem>>
    %26 = vector.broadcast %25 : f32 to vector<8x128xf32>
    %27 = arith.addf %24, %26 : vector<8x128xf32>
    %c0_22 = arith.constant 0 : index
    %c0_23 = arith.constant 0 : index
    %28 = vector.load %arg10[%c0_22, %c0_23] : memref<8x128xf32, #tpu.memory_space<vmem>>, vector<8x128xf32>
    tpu.vector_store %arg10[%c0_22, %c0_23], %27 {strides = array<i32>} : memref<8x128xf32, #tpu.memory_space<vmem>>, vector<8x128xf32>,
    return
  }
  func.func @transform_0(%arg0: i32) -> (i32, i32) {
    %c0_i32 = arith.constant 0 : i32
    %c0_i32_0 = arith.constant 0 : i32
    return %arg0, %c0_i32 : i32, i32
  }
  func.func @transform_1(%arg0: i32) -> (i32, i32) {
    %c0_i32 = arith.constant 0 : i32
    %c0_i32_0 = arith.constant 0 : i32
    return %arg0, %c0_i32 : i32, i32
  }
  func.func @transform_2(%arg0: i32) -> (i32, i32) {
    %c0_i32 = arith.constant 0 : i32
    %c0_i32_0 = arith.constant 0 : i32
    %c0_i32_1 = arith.constant 0 : i32
    return %c0_i32, %c0_i32_0 : i32, i32
  }
  func.func @transform_3(%arg0: i32) -> (i32, i32) {
    %c0_i32 = arith.constant 0 : i32
    %c0_i32_0 = arith.constant 0 : i32
    %c0_i32_1 = arith.constant 0 : i32
    return %c0_i32, %c0_i32_0 : i32, i32
  }
  func.func @transform_4(%arg0: i32) -> (i32, i32) {
    %c0_i32 = arith.constant 0 : i32
    %c0_i32_0 = arith.constant 0 : i32
    %c0_i32_1 = arith.constant 0 : i32
    return %c0_i32, %c0_i32_0 : i32, i32
  }
  func.func @transform_5(%arg0: i32) -> (i32, i32) {
    %c0_i32 = arith.constant 0 : i32
    %c0_i32_0 = arith.constant 0 : i32
    %c0_i32_1 = arith.constant 0 : i32
    return %c0_i32, %c0_i32_0 : i32, i32
  }
  func.func @transform_6(%arg0: i32) -> (i32, i32) {
    %c0_i32 = arith.constant 0 : i32
    %c0_i32_0 = arith.constant 0 : i32
    %c0_i32_1 = arith.constant 0 : i32
    return %c0_i32, %c0_i32_0 : i32, i32
  }
  func.func @transform_7(%arg0: i32) -> (i32, i32) {
    %c0_i32 = arith.constant 0 : i32
    %c0_i32_0 = arith.constant 0 : i32
    %c0_i32_1 = arith.constant 0 : i32
    return %c0_i32, %c0_i32_0 : i32, i32
  }
  func.func @transform_8(%arg0: i32) -> (i32, i32) {
    %c0_i32 = arith.constant 0 : i32
    %c0_i32_0 = arith.constant 0 : i32
    %c0_i32_1 = arith.constant 0 : i32
    return %c0_i32, %c0_i32_0 : i32, i32
  }
  func.func @transform_9(%arg0: i32) -> (i32, i32) {
    %c0_i32 = arith.constant 0 : i32
    %c0_i32_0 = arith.constant 0 : i32
    return %arg0, %c0_i32 : i32, i32
  }
}

</mosaic_0001>

<bundles_post_ra>
// kernel: critic_forward.1
= control target key start
LH: loop header
LB: loop body
LE: loop exit
PB: predicated region body
PF: predicated region fallthrough
CT: control target
= control target key end

     0   :  { %15 = vsyncpa [#allocation4], 0  ;;  %s711_s0 = inlined_call_operand.hbm [shape: f32[8,32], index: 0, kind: input, shape index: {}]   ;;  %s712_s1 = inlined_call_operand.hbm [shape: f32[8,16], index: 1, kind: input, shape index: {}]   ;;  %s713_s2 = inlined_call_operand.hbm [shape: bf16[32,128], index: 2, kind: input, shape index: {}]   ;;  %s714_s3 = inlined_call_operand.vmem [shape: f32[1,128], index: 3, kind: input, shape index: {}]   ;;  %s715_s4 = inlined_call_operand.hbm [shape: bf16[128,128], index: 4, kind: input, shape index: {}]   ;;  %s716_s5 = inlined_call_operand.hbm [shape: bf16[16,128], index: 5, kind: input, shape index: {}]   ;;  %s717_s6 = inlined_call_operand.vmem [shape: f32[1,128], index: 6, kind: input, shape index: {}]   ;;  %s718_s7 = inlined_call_operand.hbm [shape: bf16[128,128], index: 7, kind: input, shape index: {}]   ;;  %s719_s8 = inlined_call_operand.<no memory space> [shape: f32[1,1], index: 8, kind: input, shape index: {}]   ;;  %s720_s9 = inlined_call_operand.vmem [shape: f32[8,128], index: 9, kind: output, shape index: {}]  }
   0x1   :  { %16 = vsyncpa [#allocation6], 0 }
   0x2   :  { %17 = vsyncpa [#allocation9], 0  ;;  %s35_s11 = sshll.u32 %s712_s1, 4  ;;  %s36_s11 = int_to_ptr.hbm [resolvable:$true] %s35_s11 }
   0x3   :  { %18 = vsyncpa [#allocation12], 0  ;;  %s623_s12 = smov [#allocation5]   ;;  %s60_s16 = sshll.u32 %s715_s4, 4  ;;  %s61_s16 = int_to_ptr.hbm [resolvable:$true] %s60_s16 }
   0x4   :  { %s37_s13 = sshll.u32 %s623_s12, 4  ;;  %s624_s17 = smov [#allocation8]   ;;  %s38_s13 = int_to_ptr.vmem [resolvable:$true] %s37_s13 }
   0x5   :  { %40 = dma.hbm_to_vmem [thread:$0]  %s36_s11, 128, %s38_s13, [#allocation6]  }
   0x6   :  { %s62_s18 = sshll.u32 %s624_s17, 4  ;;  %s24_s21 = sshll.u32 %s711_s0, 4  ;;  %s63_s18 = int_to_ptr.vmem [resolvable:$true] %s62_s18  ;;  %s25_s21 = int_to_ptr.hbm [resolvable:$true] %s24_s21 }
   0x7   :  { %s625_s1 = smov 64   ;;  %s626_s22 = smov 4  }
   0x8   :  { %68 = dma.hbm_to_vmem [thread:$0]  %s61_s16, 1024, %s63_s18, [#allocation9], %s625_s1, %s625_s1, %s626_s22  }
   0x9   :  { %s45_s25 = sshll.u32 %s713_s2, 4  ;;  %s627_s26 = smov [#allocation3]   ;;  %s46_s25 = int_to_ptr.hbm [resolvable:$true] %s45_s25 }
   0xa   :  { %s26_s27 = sshll.u32 %s627_s26, 4  ;;  %s628_s4 = smov [#allocation7]   ;;  %s27_s27 = int_to_ptr.vmem [resolvable:$true] %s26_s27 }
   0xb   :  { %29 = dma.hbm_to_vmem [thread:$0]  %s25_s21, 128, %s27_s27, [#allocation4]  }
   0xc   :  { %s47_s28 = sshll.u32 %s628_s4, 4  ;;  %s73_s0 = sshll.u32 %s716_s5, 4  ;;  %s48_s28 = int_to_ptr.vmem [resolvable:$true] %s47_s28  ;;  %s74_s0 = int_to_ptr.hbm [resolvable:$true] %s73_s0 }
   0xd   :  { %53 = dma.hbm_to_vmem [thread:$0]  %s46_s25, 256, %s48_s28, [#allocation6], %s625_s1, %s625_s1, %s626_s22  }
   0xe   :  { %s88_s12 = sshll.u32 %s718_s7, 4  ;;  %s629_s13 = smov [#allocation10]   ;;  %s89_s12 = int_to_ptr.hbm [resolvable:$true] %s88_s12 }
   0xf   :  { %s75_s2 = sshll.u32 %s629_s13, 4  ;;  %s630_s14 = smov [#allocation11]   ;;  %s76_s2 = int_to_ptr.vmem [resolvable:$true] %s75_s2 }
  0x10   :  { %81 = dma.hbm_to_vmem [thread:$0]  %s74_s0, 128, %s76_s2, [#allocation9], %s625_s1, %s625_s1, %s626_s22  }
  0x11   :  { %s90_s15 = sshll.u32 %s630_s14, 4  ;;  %s91_s15 = int_to_ptr.vmem [resolvable:$true] %s90_s15 }
  0x12   :  { %96 = dma.hbm_to_vmem [thread:$0]  %s89_s12, 1024, %s91_s15, [#allocation12], %s625_s1, %s625_s1, %s626_s22  }
  0x13   :  { %615 = dma.done.wait [#allocation4], 128  }
  0x14   :  { %616 = vsyncadd [#allocation4], 4294967168 }
  0x15   :  { %617 = dma.done.wait [#allocation6], 384  }
  0x16   :  { %618 = vsyncadd [#allocation6], 4294966912 }
  0x17   :  { %619 = dma.done.wait [#allocation9], 1152  }
  0x18   :  { %620 = vsyncadd [#allocation9], 4294966144 }
  0x19   :  { %621 = dma.done.wait [#allocation12], 1024  }
  0x1a   :  { %622 = vsyncadd [#allocation12], 4294966272  ;;  %v443_v0 = vld [vmem:[#allocation7 + $0x8] sm:$0xff]  ;;  %v442_v2 = vld [vmem:[#allocation7] sm:$0xff]  ;;  %vm148_vm0 = vcmask 261120   ;;  %vm191_vm1 = vcmask 130048   ;;  %v293_v38 = vstv %s719_s8 }
  0x1b   :  { %v451_v1 = vld [vmem:[#allocation8 + $0x38] sm:$0xff]  ;;  %158 = vmatpush.bf16.msra.mxu0 %v443_v0  ;;  %v124_v3 = vld [vmem:[#allocation3] sm:$0xff]  ;;  %v450_v4 = vld [vmem:[#allocation8 + $0x30] sm:$0xff] }
  0x1c   :  { %256 = vmatpush.bf16.msra.mxu2 %v451_v1  ;;  %v125_v5 = vpack.c.bf16 %v124_v3, %v124_v3  ;;  %v449_v6 = vld [vmem:[#allocation8 + $0x28] sm:$0xff]  ;;  %v448_v7 = vld [vmem:[#allocation8 + $0x20] sm:$0xff]  ;;  %v447_v8 = vld [vmem:[#allocation8 + $0x18] sm:$0xff] }
  0x1d   :  { %v446_v9 = vld [vmem:[#allocation8 + $0x10] sm:$0xff]  ;;  %v445_v10 = vld [vmem:[#allocation8 + $0x8] sm:$0xff]  ;;  %v452_v11 = vld [vmem:[#allocation10] sm:$0xff] }
  0x1e   :  { %202 = vmatpush.bf16.msra.mxu1 %v452_v11  ;;  %v444_v12 = vld [vmem:[#allocation8] sm:$0xff]  ;;  %v126_v13 = vld [vmem:[#allocation5] sm:$0xff]  ;;  %v459_v16 = vld [vmem:[#allocation11 + $0x30] sm:$0xff] }
  0x1f   :  { %159 = vmatpush.bf16.msra.mxu0 %v442_v2  ;;  %v127_v14 = vpack.c.bf16 %v126_v13, %v126_v13  ;;  %v460_v15 = vld [vmem:[#allocation11 + $0x38] sm:$0xff]  ;;  %v458_v17 = vld [vmem:[#allocation11 + $0x28] sm:$0xff]  ;;  %v457_v18 = vld [vmem:[#allocation11 + $0x20] sm:$0xff] }
  0x20   :  { %257 = vmatpush.bf16.msra.mxu2 %v450_v4  ;;  %342 = vmatpush.bf16.msra.mxu3 %v460_v15  ;;  %v469_v19 = vld [vmem:[%s714_s3] ss:$0 sm:$0xff]  ;;  %v455_v26 = vld [vmem:[#allocation11 + $0x10] sm:$0xff]  ;;  %v454_v29 = vld [vmem:[#allocation11 + $0x8] sm:$0xff] }
  0x21   :  { %377 = vmatmul.msk.bf16.vlgmr.msra.gmra.mxu1 %vm191_vm1, %v127_v14  ;;  %v456_v25 = vld [vmem:[#allocation11 + $0x18] sm:$0xff]  ;;  %v453_v30 = vld [vmem:[#allocation11] sm:$0xff] }
  0x22   :  { %372 = vmatmul.msk.bf16.vlgmr.msra.gmra.mxu0 %vm148_vm0, %v125_v5  ;;  %v470_v31 = vld [vmem:[%s717_s6] ss:$0 sm:$0xff] }
  0x24   :  { %258 = vmatpush.bf16.msra.mxu2 %v449_v6  ;;  %343 = vmatpush.bf16.msra.mxu3 %v459_v16 }
  0x28   :  { %259 = vmatpush.bf16.msra.mxu2 %v448_v7  ;;  %344 = vmatpush.bf16.msra.mxu3 %v458_v17 }
  0x2c   :  { %260 = vmatpush.bf16.msra.mxu2 %v447_v8  ;;  %345 = vmatpush.bf16.msra.mxu3 %v457_v18 }
  0x30   :  { %261 = vmatpush.bf16.msra.mxu2 %v446_v9  ;;  %346 = vmatpush.bf16.msra.mxu3 %v456_v25 }
  0x34   :  { %262 = vmatpush.bf16.msra.mxu2 %v445_v10  ;;  %347 = vmatpush.bf16.msra.mxu3 %v455_v26 }
  0x38   :  { %263 = vmatpush.bf16.msra.mxu2 %v444_v12  ;;  %348 = vmatpush.bf16.msra.mxu3 %v454_v29 }
  0x3c   :  { %349 = vmatpush.bf16.msra.mxu3 %v453_v30 }
  0x9e   :  { %v204_v27 = vpop.f32.mrf.mxu1 }
  0x9f   :  { %v161_v20 = vpop.f32.mrf.mxu0 }
  0xa0   :  { %v162_v21 = vadd.f32 %v469_v19, %v161_v20 }
  0xa2   :  { %v165_v22 = vmax.f32 %v162_v21, 0.0 }
  0xa4   :  { %v166_v23 = vpack.c.bf16 %v165_v22, %v165_v22 }
  0xa6   :  { %264 = vmatmul.bf16.vlgmr.msra.gmra.mxu2 %v166_v23  ;;  %v206_v28 = vpop.f32.mrf.mxu1 }
  0xa7   :  { %v163_v24 = vpop.f32.mrf.mxu0 }
 0x129   :  { %v265_v32 = vpop.f32.mrf.mxu2 }
 0x12a   :  { %v266_v33 = vadd.f32 %v265_v32, %v204_v27 }
 0x12c   :  { %v273_v34 = vadd.f32 %v470_v31, %v266_v33 }
 0x12e   :  { %v274_v35 = vmax.f32 %v273_v34, 0.0 }
 0x130   :  { %v275_v36 = vpack.c.bf16 %v274_v35, %v274_v35 }
 0x131   :  { %v267_v37 = vpop.f32.mrf.mxu2 }
 0x132   :  { %350 = vmatmul.bf16.vlgmr.msra.gmra.mxu3 %v275_v36 }
 0x1b5   :  { %v351_v39 = vpop.f32.mrf.mxu3 }
 0x1b6   :  { %v352_v40 = vadd.f32 %v351_v39, %v293_v38 }
 0x1b8   :  { %355 = vst [vmem:[%s720_s9] sm:$0xff] %v352_v40 }
 0x1bd   :  { %v353_v41 = vpop.f32.mrf.mxu3 }
 0x1be   :  { %360 = vsyncpa [#allocation4], 1 }
 0x1bf   :  { %361 = vsyncpa [#allocation6], 1 }
 0x1c0   :  { %362 = vsyncpa [#allocation9], 1 }
 0x1c1   :  { %363 = vsyncpa [#allocation12], 1 }

</bundles_post_ra>
